<compile_context>
chip_gen: v7x
topology: tpu7x:2x2x1
jax: 0.10.0
libtpu: 0.0.40
codegen_flags: <defaults>
</compile_context>

<pallas_src>
import math
from functools import partial

import jax
import jax.numpy as jnp
from jax.experimental import pallas as pl
from jax.experimental.pallas import tpu as pltpu

LN_EPS = 1e-6  # norm_layer = partial(nn.LayerNorm, eps=1e-6)


def _round_up(x, m):
    return (x + m - 1) // m * m


def _pick_batch_tile(B, max_bt=8):
    # Largest divisor of B <= max_bt (v5e/v6e want big tiles; v7x gets the
    # parallel axis across its two TensorCores when B // bt >= 2).
    for bt in range(min(B, max_bt), 0, -1):
        if B % bt == 0:
            return bt
    return 1


def _pick_row_tile(M, cap=256):
    # Largest multiple-of-8 divisor of M that is <= cap (M is a multiple of 8).
    best = 8
    d = 8
    while d <= min(M, cap):
        if M % d == 0:
            best = d
        d += 8
    return best


def _vmem_limit_bytes(frac=0.8):
    # Generation-dependent budget: ~51 MiB on v7x (64 MiB physical),
    # ~107 MiB on v5e/v6e (128 MiB physical).  Leave headroom for compiler
    # internal scratch + double-buffered BlockSpec copies.
    try:
        cap = pltpu.get_tpu_info().vmem_capacity_bytes
        if cap and cap > 0:
            return int(cap * frac)
    except Exception:
        pass
    return None


# ----------------------------- in-kernel helpers -----------------------------
def _layernorm(x, w, b):
    # Two-pass (centered) variance: avoids cancellation of E[x^2] - mu^2 on
    # post-residual activations with large mean.
    mu = jnp.mean(x, axis=-1, keepdims=True)
    xc = x - mu
    var = jnp.mean(xc * xc, axis=-1, keepdims=True)
    return xc * jax.lax.rsqrt(var + LN_EPS) * w + b


def _gelu(x):
    # TODO(synk): nn.GELU default is exact erf-GELU; tanh approximation used
    # since lax.erf has no guaranteed Mosaic lowering (~1e-3 deviation).
    c = math.sqrt(2.0 / math.pi)
    return 0.5 * x * (1.0 + jnp.tanh(c * (x + 0.044715 * x * x * x)))


# --------------------------- patch-embedding kernel ---------------------------
def _patch_embed_kernel(xp_ref, w_ref, b_ref, o_ref):
    o_ref[...] = (
        jnp.dot(xp_ref[...], w_ref[...], preferred_element_type=jnp.float32)
        + b_ref[0]
    )


def patch_embed(x_nchw, conv_w, conv_b, patch_size):
    B, C, H, W = x_nchw.shape
    P = patch_size
    gh, gw = H // P, W // P
    E = conv_w.shape[0]
    # im2col (XLA glue): (B,C,H,W) -> (B, gh, gw, C, P, P) -> (B*gh*gw, C*P*P)
    xp = x_nchw.reshape(B, C, gh, P, gw, P).transpose(0, 2, 4, 1, 3, 5)
    xp = xp.reshape(B * gh * gw, C * P * P)
    w = conv_w.reshape(E, C * P * P).T            # (K, E)
    b = conv_b.reshape(1, E)
    M, K = xp.shape
    TM = 512 if M >= 512 else _round_up(M, 8)     # mem-bound: bigger tile, ~85% roofline
    M_pad = _round_up(M, TM)
    if M_pad != M:
        xp = jnp.pad(xp, ((0, M_pad - M), (0, 0)))
    out = pl.pallas_call(
        _patch_embed_kernel,
        out_shape=jax.ShapeDtypeStruct((M_pad, E), jnp.float32),
        grid=(M_pad // TM,),
        in_specs=[
            pl.BlockSpec((TM, K), lambda i: (i, 0)),
            pl.BlockSpec((K, E), lambda i: (0, 0)),
            pl.BlockSpec((1, E), lambda i: (0, 0)),
        ],
        out_specs=pl.BlockSpec((TM, E), lambda i: (i, 0)),
        compiler_params=pltpu.CompilerParams(dimension_semantics=("parallel",)),
    )(xp.astype(jnp.bfloat16), w.astype(jnp.bfloat16), b)
    return out[:M].reshape(B, gh * gw, E)


# ------------------------ depth-gridded encoder stack -------------------------
def _encoder_stack_kernel(num_heads, n_real, mlp_tile,
                          x_ref,
                          ln1w_ref, ln1b_ref, wqkv_ref, bqkv_ref,
                          wp_ref, bp_ref, ln2w_ref, ln2b_ref,
                          w1_ref, b1_ref, w2_ref, b2_ref,
                          nw_ref, nb_ref,
                          o_ref,
                          attn_ref, xs_ref):
    layer = pl.program_id(1)
    depth = pl.num_programs(1)

    @pl.when(layer == 0)
    def _():
        o_ref[...] = x_ref[...]          # (re)seed the resident activation carry

    bt, Np, C = o_ref.shape
    H = num_heads
    hd = C // H
    M = bt * Np
    pad_tokens = Np != n_real            # static python bool

    x = o_ref[...].reshape(M, C)         # fused (bt*Np, C) row slab, f32

    # ---- pre-norm + fused QKV projection (full-width MXU, scale folded in) ----
    h1 = _layernorm(x, ln1w_ref[0], ln1b_ref[0]).astype(jnp.bfloat16)
    qkv = jnp.dot(h1, wqkv_ref[0], preferred_element_type=jnp.float32) + bqkv_ref[0]

    # key-padding mask, hoisted out of the head loop (computed once per layer)
    if pad_tokens:
        kmask = jax.lax.broadcasted_iota(jnp.int32, (bt, Np, Np), 2) < n_real

    # ---- per-head attention; head h writes lanes [h*hd,(h+1)*hd) of attn_ref --
    # TODO(synk): for H=12 (ViT-B) switch this static loop to lax.fori_loop with
    # dynamic lane slices to bound vreg live ranges / code size.
    for hh in range(H):
        lo = hh * hd
        q = qkv[:, lo:lo + hd].reshape(bt, Np, hd).astype(jnp.bfloat16)
        k = qkv[:, C + lo:C + lo + hd].reshape(bt, Np, hd).astype(jnp.bfloat16)
        v = qkv[:, 2 * C + lo:2 * C + lo + hd].reshape(bt, Np, hd).astype(jnp.bfloat16)
        s = jnp.einsum("bqd,bkd->bqk", q, k, preferred_element_type=jnp.float32)
        if pad_tokens:                   # mask out padded key tokens
            s = jnp.where(kmask, s, -1e30)
        s = s - jnp.max(s, axis=-1, keepdims=True)
        p = jnp.exp(s)
        p = p * pl.reciprocal(jnp.sum(p, axis=-1, keepdims=True), approx=True)
        oh = jnp.einsum("bqk,bkd->bqd", p.astype(jnp.bfloat16), v,
                        preferred_element_type=jnp.float32)
        attn_ref[:, lo:lo + hd] = oh.reshape(M, hd).astype(jnp.bfloat16)

    # ---- single output projection (K = C) + attention residual ----
    x = x + jnp.dot(attn_ref[...], wp_ref[0],
                    preferred_element_type=jnp.float32) + bp_ref[0]

    # ---- pre-norm + MLP, row-tiled so the (rows, Hid) hidden stays bounded ----
    xs_ref[...] = x
    n_tiles = M // mlp_tile              # static python int

    @pl.loop(0, n_tiles)
    def _(t):
        r0 = pl.multiple_of(t * mlp_tile, 8)
        xt = xs_ref[pl.ds(r0, mlp_tile), :]
        ht = _layernorm(xt, ln2w_ref[0], ln2b_ref[0]).astype(jnp.bfloat16)
        ht = jnp.dot(ht, w1_ref[0], preferred_element_type=jnp.float32) + b1_ref[0]
        ht = _gelu(ht)
        ht = jnp.dot(ht.astype(jnp.bfloat16), w2_ref[0],
                     preferred_element_type=jnp.float32) + b2_ref[0]
        xs_ref[pl.ds(r0, mlp_tile), :] = xt + ht   # MLP residual

    xo = xs_ref[...].reshape(bt, Np, C)
    if pad_tokens:                       # keep padded token rows exactly zero
        tmask = jax.lax.broadcasted_iota(jnp.int32, (bt, Np, 1), 1) < n_real
        xo = jnp.where(tmask, xo, 0.0)

    @pl.when(layer < depth - 1)
    def _():
        o_ref[...] = xo                  # carry to next layer

    @pl.when(layer == depth - 1)
    def _():                             # fused final LayerNorm (model.norm)
        o_ref[...] = _layernorm(xo.reshape(M, C),
                                nw_ref[0], nb_ref[0]).reshape(bt, Np, C)


def _stack_block_params(blocks, num_heads):
    C = blocks[0]["ln1_w"].shape[0]
    hd = C // num_heads
    Hid = blocks[0]["fc1_w"].shape[0]
    scale = hd ** -0.5
    bf16 = jnp.bfloat16

    def st(fn, dtype=None):
        a = jnp.stack([fn(b) for b in blocks], axis=0)
        return a.astype(dtype) if dtype is not None else a

    def qkv_w(b):
        w = b["qkv_w"].T                          # torch Linear (out,in) -> (C, 3C)
        return w.at[:, :C].multiply(scale)        # fold 1/sqrt(hd) into Q columns

    def qkv_b(b):
        v = b["qkv_b"].reshape(1, 3 * C)
        return v.at[:, :C].multiply(scale)

    return dict(
        ln1_w=st(lambda b: b["ln1_w"].reshape(1, C)),
        ln1_b=st(lambda b: b["ln1_b"].reshape(1, C)),
        wqkv=st(qkv_w, bf16),
        bqkv=st(qkv_b),
        wp=st(lambda b: b["proj_w"].T, bf16),
        bp=st(lambda b: b["proj_b"].reshape(1, C)),
        ln2_w=st(lambda b: b["ln2_w"].reshape(1, C)),
        ln2_b=st(lambda b: b["ln2_b"].reshape(1, C)),
        w1=st(lambda b: b["fc1_w"].T, bf16),
        b1=st(lambda b: b["fc1_b"].reshape(1, Hid)),
        w2=st(lambda b: b["fc2_w"].T, bf16),
        b2=st(lambda b: b["fc2_b"].reshape(1, C)),
    )


def encoder_stack(t_pad, sp, norm_w, norm_b, *, num_heads, n_real,
                  batch_tile, mlp_row_tile):
    B, Np, C = t_pad.shape
    depth = sp["wqkv"].shape[0]
    assert B % batch_tile == 0
    nb = B // batch_tile

    order = ["ln1_w", "ln1_b", "wqkv", "bqkv", "wp", "bp",
             "ln2_w", "ln2_b", "w1", "b1", "w2", "b2"]
    args = [t_pad] + [sp[k] for k in order] + [norm_w.reshape(1, C),
                                               norm_b.reshape(1, C)]

    def layer_spec(a):                   # select layer l's weight slab
        nd = a.ndim
        return pl.BlockSpec((1,) + a.shape[1:],
                            lambda b, l, _nd=nd: (l,) + (0,) * (_nd - 1))

    in_specs = [pl.BlockSpec((batch_tile, Np, C), lambda b, l: (b, 0, 0))]
    in_specs += [layer_spec(sp[k]) for k in order]
    in_specs += [pl.BlockSpec((1, C), lambda b, l: (0, 0))] * 2   # final LN w, b

    cp = dict(dimension_semantics=("parallel", "arbitrary"))
    vl = _vmem_limit_bytes()
    if vl is not None:
        cp["vmem_limit_bytes"] = vl

    return pl.pallas_call(
        partial(_encoder_stack_kernel, num_heads, n_real, mlp_row_tile),
        out_shape=jax.ShapeDtypeStruct((B, Np, C), jnp.float32),
        grid=(nb, depth),
        in_specs=in_specs,
        out_specs=pl.BlockSpec((batch_tile, Np, C), lambda b, l: (b, 0, 0)),
        scratch_shapes=[
            pltpu.VMEM((batch_tile * Np, C), jnp.bfloat16),  # head-concat attn out
            pltpu.VMEM((batch_tile * Np, C), jnp.float32),   # MLP row-tiling stage
        ],
        compiler_params=pltpu.CompilerParams(**cp),
    )(*args)


# ------------------------------ parameter init -------------------------------
def init_params(key, *, in_chans, patch_size, embed_dim, depth, mlp_ratio, num_patches):
    hidden = int(embed_dim * mlp_ratio)
    ks = iter(jax.random.split(key, 8 + depth * 6))
    n = lambda shape: 0.02 * jax.random.normal(next(ks), shape, jnp.float32)

    params = {
        "patch_w": n((embed_dim, in_chans, patch_size, patch_size)),   # Conv2d weight
        "patch_b": jnp.zeros((embed_dim,), jnp.float32),
        "cls_token": n((1, 1, embed_dim)),
        "pos_embed": n((1, num_patches + 1, embed_dim)),
        "norm_w": jnp.ones((embed_dim,), jnp.float32),
        "norm_b": jnp.zeros((embed_dim,), jnp.float32),
        "blocks": [],
    }
    for _ in range(depth):
        params["blocks"].append({
            "ln1_w": jnp.ones((embed_dim,), jnp.float32),
            "ln1_b": jnp.zeros((embed_dim,), jnp.float32),
            "qkv_w": n((3 * embed_dim, embed_dim)),     # torch Linear: (out, in)
            "qkv_b": jnp.zeros((3 * embed_dim,), jnp.float32),
            "proj_w": n((embed_dim, embed_dim)),
            "proj_b": jnp.zeros((embed_dim,), jnp.float32),
            "ln2_w": jnp.ones((embed_dim,), jnp.float32),
            "ln2_b": jnp.zeros((embed_dim,), jnp.float32),
            "fc1_w": n((hidden, embed_dim)),
            "fc1_b": jnp.zeros((hidden,), jnp.float32),
            "fc2_w": n((embed_dim, hidden)),
            "fc2_b": jnp.zeros((embed_dim,), jnp.float32),
        })
    return params


# ------------------------------ full forward ---------------------------------
def vit_forward(x, params, *, patch_size, num_heads):
    B = x.shape[0]
    tok = patch_embed(x, params["patch_w"], params["patch_b"], patch_size)  # (B, P, E)
    E = tok.shape[-1]
    cls = jnp.broadcast_to(params["cls_token"], (B, 1, E))
    t = jnp.concatenate([cls, tok], axis=1)
    t = t + params["pos_embed"][:, : t.shape[1], :]
    # pos_drop / drop_path / dropout are identity at rate 0.0
    n_real = t.shape[1]
    n_pad = _round_up(n_real, 8)                     # fill sublanes
    if n_pad != n_real:
        t = jnp.pad(t, ((0, 0), (0, n_pad - n_real), (0, 0)))
    sp = _stack_block_params(params["blocks"], num_heads)
    bt = _pick_batch_tile(B)
    mlp_tile = _pick_row_tile(bt * n_pad)
    t = encoder_stack(t, sp, params["norm_w"], params["norm_b"],
                      num_heads=num_heads, n_real=n_real,
                      batch_tile=bt, mlp_row_tile=mlp_tile)
    # final LayerNorm already fused into the last encoder iteration
    return t[:, :n_real, :]


if __name__ == "__main__":
    # Small config consistent with the module: img 16, patch 8 -> 4 patches (+1 cls)
    B, C_in, IMG, PATCH = 2, 4, 16, 8
    EMBED, DEPTH, HEADS, MLP_RATIO = 32, 2, 4, 4.0
    NUM_PATCHES = (IMG // PATCH) ** 2

    key = jax.random.PRNGKey(0)
    k_x, k_p = jax.random.split(key)
    x = jax.random.normal(k_x, (B, C_in, IMG, IMG), jnp.float32)   # NCHW like PyTorch

    params = init_params(k_p, in_chans=C_in, patch_size=PATCH, embed_dim=EMBED,
                         depth=DEPTH, mlp_ratio=MLP_RATIO, num_patches=NUM_PATCHES)

    out = vit_forward(x, params, patch_size=PATCH, num_heads=HEADS)
    out = jax.block_until_ready(out)
    assert out.shape == (B, NUM_PATCHES + 1, EMBED)
    assert bool(jnp.all(jnp.isfinite(out)))
    print("KERNEL_OK")
</pallas_src>

<mosaic_0001>
module attributes {stable_mosaic.version = 11 : i64} {
  func.func @_patch_embed_kernel(%arg0: i32, %arg1: memref<8x256xbf16, #tpu.memory_space<vmem>>, %arg2: memref<256x32xbf16, #tpu.memory_space<vmem>>, %arg3: memref<1x32xf32, #tpu.memory_space<vmem>>, %arg4: memref<8x32xf32, #tpu.memory_space<vmem>>) attributes {dimension_semantics = [#tpu.dimension_semantics<parallel>], iteration_bounds = array<i64: 1>, scalar_prefetch = 0 : i64, scratch_operands = 0 : i64, tpu.core_type = #tpu.core_type<tc>, window_params = [{transform_indices = @transform_0, window_bounds = array<i64: 8, 256>}, {pipeline_mode = #tpu.pipeline_mode<synchronous>, transform_indices = @transform_1, window_bounds = array<i64: 256, 32>}, {pipeline_mode = #tpu.pipeline_mode<synchronous>, transform_indices = @transform_2, window_bounds = array<i64: 1, 32>}, {transform_indices = @transform_3, window_bounds = array<i64: 8, 32>}]} {
    %c0 = arith.constant 0 : index
    %c0_0 = arith.constant 0 : index
    %0 = vector.load %arg1[%c0, %c0_0] : memref<8x256xbf16, #tpu.memory_space<vmem>>, vector<8x256xbf16>
    %c0_1 = arith.constant 0 : index
    %c0_2 = arith.constant 0 : index
    %1 = vector.load %arg2[%c0_1, %c0_2] : memref<256x32xbf16, #tpu.memory_space<vmem>>, vector<256x32xbf16>
    %cst = arith.constant dense<0.000000e+00> : vector<8x32xf32>
    %2 = tpu.matmul %0, %1, %cst {dimension_numbers = #tpu.dot_dimension_numbers<[1], [0], [0], [1], [0, 0, 1, 1], [], []>} : vector<8x256xbf16>, vector<256x32xbf16>, vector<8x32xf32> -> vector<8x32xf32>
    %c0_3 = arith.constant 0 : index
    %c0_4 = arith.constant 0 : index
    %3 = vector.load %arg3[%c0_3, %c0_4] : memref<1x32xf32, #tpu.memory_space<vmem>>, vector<1x32xf32>
    %4 = vector.shape_cast %3 : vector<1x32xf32> to vector<32xf32>
    %5 = vector.shape_cast %4 : vector<32xf32> to vector<1x32xf32>
    %6 = vector.broadcast %5 : vector<1x32xf32> to vector<8x32xf32>
    %7 = arith.addf %2, %6 : vector<8x32xf32>
    %c0_5 = arith.constant 0 : index
    %c0_6 = arith.constant 0 : index
    %8 = vector.load %arg4[%c0_5, %c0_6] : memref<8x32xf32, #tpu.memory_space<vmem>>, vector<8x32xf32>
    tpu.vector_store %arg4[%c0_5, %c0_6], %7 {strides = array<i32>} : memref<8x32xf32, #tpu.memory_space<vmem>>, vector<8x32xf32>,
    return
  }
  func.func @transform_0(%arg0: i32) -> (i32, i32) {
    %c0_i32 = arith.constant 0 : i32
    %c0_i32_0 = arith.constant 0 : i32
    return %arg0, %c0_i32 : i32, i32
  }
  func.func @transform_1(%arg0: i32) -> (i32, i32) {
    %c0_i32 = arith.constant 0 : i32
    %c0_i32_0 = arith.constant 0 : i32
    %c0_i32_1 = arith.constant 0 : i32
    return %c0_i32, %c0_i32_0 : i32, i32
  }
  func.func @transform_2(%arg0: i32) -> (i32, i32) {
    %c0_i32 = arith.constant 0 : i32
    %c0_i32_0 = arith.constant 0 : i32
    %c0_i32_1 = arith.constant 0 : i32
    return %c0_i32, %c0_i32_0 : i32, i32
  }
  func.func @transform_3(%arg0: i32) -> (i32, i32) {
    %c0_i32 = arith.constant 0 : i32
    %c0_i32_0 = arith.constant 0 : i32
    return %arg0, %c0_i32 : i32, i32
  }
}

</mosaic_0001>

<bundles_post_ra>
// kernel: tpu_custom_call.1
= control target key start
LH: loop header
LB: loop body
LE: loop exit
PB: predicated region body
PF: predicated region fallthrough
CT: control target
= control target key end

     0   :  { %s386_s0 = inlined_call_operand.vmem [shape: bf16[8,256], index: 0, kind: input, shape index: {}]   ;;  %s387_s1 = inlined_call_operand.vmem [shape: bf16[256,32], index: 1, kind: input, shape index: {}]   ;;  %s388_s2 = inlined_call_operand.vmem [shape: f32[1,32], index: 2, kind: input, shape index: {}]   ;;  %s389_s3 = inlined_call_operand.hbm [shape: f32[8,32], index: 3, kind: output, shape index: {}]  }
   0x1   :  { %v257_v0 = vld [vmem:[%s387_s1 + $0x40] sm:$0xff]   ;;  %v259_v2 = vld [vmem:[%s387_s1 + $0x48] sm:$0xff]   ;;  %v261_v4 = vld [vmem:[%s387_s1 + $0x50] sm:$0xff]  }
   0x2   :  { %v258_v1 = vld [vmem:[%s387_s1] sm:$0xff]   ;;  %234 = vmatprep.subr.bf16.mxu0 %v257_v0  ;;  %v260_v3 = vld [vmem:[%s387_s1 + $0x8] sm:$0xff]   ;;  %v262_v5 = vld [vmem:[%s387_s1 + $0x10] sm:$0xff]  }
   0x3   :  { %235 = vmatpush3.bf16.msra.mxu0 %v258_v1  ;;  %v263_v6 = vld [vmem:[%s387_s1 + $0x58] sm:$0xff]   ;;  %v265_v8 = vld [vmem:[%s387_s1 + $0x60] sm:$0xff]   ;;  %v267_v10 = vld [vmem:[%s387_s1 + $0x68] sm:$0xff]  }
   0x4   :  { %236 = vmatprep.subr.bf16.mxu0 %v259_v2  ;;  %v264_v7 = vld [vmem:[%s387_s1 + $0x18] sm:$0xff]   ;;  %v266_v9 = vld [vmem:[%s387_s1 + $0x20] sm:$0xff]  }
   0x5   :  { %v16_v11 = vld [vmem:[%s386_s0] sm:$0xff] }
   0x7   :  { %237 = vmatpush3.bf16.msra.mxu0 %v260_v3 }
   0x8   :  { %238 = vmatprep.subr.bf16.mxu0 %v261_v4 }
   0xb   :  { %239 = vmatpush3.bf16.msra.mxu0 %v262_v5 }
   0xc   :  { %240 = vmatprep.subr.bf16.mxu0 %v263_v6 }
   0xf   :  { %241 = vmatpush3.bf16.msra.mxu0 %v264_v7 }
  0x10   :  { %242 = vmatprep.subr.bf16.mxu0 %v265_v8 }
  0x11   :  { %8 = vsyncpa [#allocation3], 0  ;;  %v217_v12 = vcombine.high %v16_v11, %v16_v11  ;;  %v268_v13 = vld [vmem:[%s387_s1 + $0x28] sm:$0xff]   ;;  %v269_v14 = vld [vmem:[%s387_s1 + $0x70] sm:$0xff]   ;;  %v216_v18 = vcombine.low %v16_v11, %v16_v11  ;;  %s299_s20 = smov [#allocation2]   ;;  %vm199_vm0 = vcmask 261120  }
  0x12   :  { %v270_v15 = vld [vmem:[%s387_s1 + $0x30] sm:$0xff]   ;;  %v271_v16 = vld [vmem:[%s387_s1 + $0x78] sm:$0xff]   ;;  %v215_v20 = vld [vmem:[%s388_s2] ss:$0 sm:$0xff]  ;;  %s207_s21 = sshll.u32 %s299_s20, 4  ;;  %s208_s21 = int_to_ptr.vmem [resolvable:$true] %s207_s21 }
  0x13   :  { %243 = vmatpush3.bf16.msra.mxu0 %v266_v9  ;;  %191 = vmatprep.mubr.bf16.mxu0 %v217_v12  ;;  %v272_v17 = vld [vmem:[%s387_s1 + $0x38] sm:$0xff]   ;;  %s275_s1 = scalar_lea.vmem %s208_s21, 128  ;;  %p280_p1 = scmp.lt.s32.totalorder %s208_s21, %s208_s21 }
  0x14   :  { %244 = vmatprep.subr.bf16.mxu0 %v267_v10  ;;  %p276_p0 = scmp.ne.s32.totalorder %s208_s21, %s275_s1  ;;  %p281_p2 = scmp.lt.s32.totalorder %s275_s1, %s275_s1 }
  0x16   :  { %p282_p3 = por %p281_p2, %p280_p1 }
  0x17   :  { %245 = vmatpush3.bf16.msra.mxu0 %v268_v13 }
  0x18   :  { %246 = vmatprep.subr.bf16.mxu0 %v269_v14  ;;  %p283_p4 = pnand %p282_p3, %p276_p0 }
  0x1b   :  { %247 = vmatpush3.bf16.msra.mxu0 %v270_v15 }
  0x1c   :  { %248 = vmatprep.subr.bf16.mxu0 %v271_v16 }
  0x1f   :  { %249 = vmatpush3.bf16.msra.mxu0 %v272_v17 }
  0x22   :  { %192 = vmatmul.mubr.bf16.vlgmr.msra.gmra.mrb[0].mxu0 %v216_v18 }
  0xf5   :  { %v250_v19 = vpop.f32.mrb[0].mxu0 }
  0xf6   :  { %v251_v21 = vpop.f32.mrb[1].mxu0 }
  0xf7   :  { %v252_v22 = vadd.f32 %v251_v21, %v250_v19  ;;  %v253_v23 = vpop.f32.mrb[2].mxu0 }
  0xf8   :  { %v254_v24 = vpop.f32.mrb[3].mxu0 }
  0xf9   :  { %v194_v25 = vadd.f32 %v252_v22, %v215_v20 }
  0xfb   :  { %200 = vst.msk [vmem:[#allocation2] sm:$0xff] %vm199_vm0, %v194_v25 }
  0xfc   :  { %286 = shalt.err (!%p283_p4)
}
  0xfd   :  { %s287_s2 = scalar_lea.hbm %s389_s3, 128 }
  0xfe   :  { %p288_p5 = scmp.ne.s32.totalorder %s389_s3, %s287_s2  ;;  %p291_p6 = scmp.lt.u32.totalorder %s287_s2, %s389_s3 }
 0x100   :  { %p293_p7 = pnand %p291_p6, %p288_p5 }
 0x102   :  { %296 = shalt.err (!%p293_p7)
}
 0x103   :  { %210 = dma.vmem_to_hbm [thread:$0]  %s208_s21, 128, %s389_s3, [#allocation3]  }
 0x104   :  { %297 = dma.done.wait [#allocation3], 128  }
 0x105   :  { %298 = vsyncadd [#allocation3], 4294967168 }
 0x106   :  { %214 = vsyncpa [#allocation3], 1 }

</bundles_post_ra>
